<compile_context>
chip_gen: v5e
topology: v5e:2x2
jax: 0.10.0
libtpu: 0.0.40
codegen_flags: <defaults>
</compile_context>

<pallas_src>
import functools

import jax
import jax.numpy as jnp
from jax.experimental import pallas as pl
from jax.experimental.pallas import tpu as pltpu


def _eca_kernel(w_ref, x_ref, o_ref, acc_ref, *, inv_hw, channels, n_groups):
    """Fused ECA weights: avg-pool -> conv1d(k=3, pad=1) -> sigmoid.

    w_ref  : SMEM (3,)                 conv1d weight
    x_ref  : VMEM (Bt, C, TILE_HW)     one spatial chunk of Bt batch elements
    o_ref  : VMEM (Bt, 1, C)           attention weights (written on last chunk)
    acc_ref: VMEM (Bt, C, 128) f32     same-lane partial-sum accumulator
    """
    k = pl.program_id(1)

    @pl.when(k == 0)
    def _init():
        acc_ref[...] = jnp.zeros_like(acc_ref)

    # Steady state: pure VALU accumulation of 128-lane-aligned slices of the
    # block (no cross-lane reduce, no layout change per step).
    if n_groups <= 8:
        for g in range(n_groups):           # small static unroll
            acc_ref[...] += x_ref[:, :, pl.ds(g * 128, 128)].astype(jnp.float32)
    else:
        def _body(g, carry):
            off = pl.multiple_of(g * 128, 128)
            acc_ref[...] += x_ref[:, :, pl.ds(off, 128)].astype(jnp.float32)
            return carry
        jax.lax.fori_loop(0, n_groups, _body, 0, unroll=4)

    @pl.when(k == pl.num_programs(1) - 1)
    def _finalize():
        # One cross-lane reduce per block (cheap: (Bt, C, 128) -> (Bt, C)),
        # then mean over the true h*w (zero padding is sum-neutral).
        y = jnp.sum(acc_ref[...], axis=-1) * inv_hw          # (Bt, C) f32

        # Conv1d over channels, kernel 3, zero pad 1, no bias:
        #   out[c] = w0*y[c-1] + w1*y[c] + w2*y[c+1]
        idx = jax.lax.broadcasted_iota(jnp.int32, y.shape, 1)
        y_prev = jnp.where(idx == 0, 0.0, pltpu.roll(y, shift=1, axis=1))
        # circular shift by C-1 == shift by -1; pltpu.roll needs shift >= 0.
        y_next = jnp.where(idx == channels - 1, 0.0,
                           pltpu.roll(y, shift=channels - 1, axis=1))

        out = w_ref[0] * y_prev + w_ref[1] * y + w_ref[2] * y_next
        out = jax.nn.sigmoid(out)                             # (Bt, C)
        o_ref[...] = out[:, None, :].astype(o_ref.dtype)


def _vmem_budgets():
    """(vmem_limit_bytes, per-block byte budget), generation aware."""
    try:
        phys = int(pltpu.get_tpu_info().vmem_capacity_bytes)
    except Exception:  # pragma: no cover - conservative fallback
        phys = 64 * 1024 * 1024
    if phys <= 64 * 1024 * 1024:
        # v7x class: 64 MiB physical, 32 MiB scoped default.  12 MiB block
        # x2 double-buffer = 24 MiB, leaving headroom for acc/output.
        return 32 * 1024 * 1024, 12 * 1024 * 1024
    # v5e / v6e class: 128 MiB physical.  Explicit limit (v5e default is only
    # 16 MiB scoped) and larger contiguous blocks.
    return 64 * 1024 * 1024, 24 * 1024 * 1024


def _choose_blocking(b, c, hw, itemsize, block_budget):
    """Pick (bt, tile_groups, n_chunks, hw_pad).

    Prefers one contiguous full-hw block (tile_hw == hw_pad) and folds batch
    into the block while keeping >= 2 blocks along the parallel axis when
    b >= 2 (v7x megacore).  Falls back to spatial tiling for huge maps.
    """
    groups_needed = -(-hw // 128)                       # ceil(hw / 128)
    bytes_per_group = c * 128 * itemsize                # one 128-lane slab
    groups_budget = max(1, block_budget // bytes_per_group)

    if groups_needed <= groups_budget:
        n_chunks = 1
        tile_groups = groups_needed
    else:
        n_chunks = -(-groups_needed // groups_budget)
        tile_groups = -(-groups_needed // n_chunks)     # balanced, minimal pad
    hw_pad = n_chunks * tile_groups * 128

    if n_chunks == 1:
        bt_max = max(1, block_budget // max(1, c * hw_pad * itemsize))
        bt_cap = max(1, b // 2) if b >= 2 else 1        # keep 2 TCs busy
        bt = max(1, min(bt_max, bt_cap, b))
        while b % bt != 0:                              # largest divisor of b
            bt -= 1
    else:
        bt = 1
    return bt, tile_groups, n_chunks, hw_pad


def eca_weight_forward(x, conv_w, *, block_budget_bytes=None):
    """x: (b, c, h, w) f32/bf16, conv_w: Conv1d weight ((1,1,3)/(1,3)/(3,)).

    Returns the (b, c, 1, 1) float32 attention weights (sigmoid output).
    """
    b, c, h, w = x.shape
    hw = h * w
    itemsize = x.dtype.itemsize
    w_flat = jnp.asarray(conv_w, jnp.float32).reshape(3)

    vmem_limit, block_budget = _vmem_budgets()
    if block_budget_bytes is not None:
        block_budget = int(block_budget_bytes)

    bt, tile_groups, n_chunks, hw_pad = _choose_blocking(
        b, c, hw, itemsize, block_budget)
    tile_hw = tile_groups * 128

    x_flat = x.reshape(b, c, hw)                        # free view for NCHW
    if hw_pad != hw:
        # Zero padding keeps DMA rows lane-dense; sum-neutral (inv_hw uses hw).
        x_flat = jnp.pad(x_flat, ((0, 0), (0, 0), (0, hw_pad - hw)))

    kernel = functools.partial(
        _eca_kernel, inv_hw=1.0 / float(hw), channels=c, n_groups=tile_groups)

    out = pl.pallas_call(
        kernel,
        out_shape=jax.ShapeDtypeStruct((b, 1, c), jnp.float32),
        grid=(b // bt, n_chunks),
        in_specs=[
            pl.BlockSpec(memory_space=pltpu.MemorySpace.SMEM),        # conv w
            pl.BlockSpec((bt, c, tile_hw), lambda i, k: (i, 0, k)),   # x block
        ],
        out_specs=pl.BlockSpec((bt, 1, c), lambda i, k: (i, 0, 0)),
        scratch_shapes=[pltpu.VMEM((bt, c, 128), jnp.float32)],
        compiler_params=pltpu.CompilerParams(
            dimension_semantics=("parallel", "arbitrary"),
            vmem_limit_bytes=vmem_limit,
        ),
        cost_estimate=pl.CostEstimate(
            flops=b * c * (hw_pad + 128) + 6 * b * c,
            transcendentals=b * c,
            bytes_accessed=b * c * hw_pad * itemsize + b * c * 4 + 3 * 4,
        ),
    )(w_flat, x_flat)

    # (b, 1, c) -> (b, c, 1, 1)   (matches y.transpose(-1,-2).unsqueeze(-1))
    return out.reshape(b, c)[:, :, None, None]


def _reference(x, conv_w):
    """Pure-JAX reference mirroring the PyTorch ECAWeightModule forward."""
    y = jnp.mean(x.astype(jnp.float32), axis=(2, 3))      # (b, c)
    yp = jnp.pad(y, ((0, 0), (1, 1)))                     # zero-pad channels
    wv = jnp.asarray(conv_w, jnp.float32).reshape(3)
    out = wv[0] * yp[:, :-2] + wv[1] * yp[:, 1:-1] + wv[2] * yp[:, 2:]
    return jax.nn.sigmoid(out)[:, :, None, None]


def _check(x, conv_w, **kw):
    out = jax.block_until_ready(eca_weight_forward(x, conv_w, **kw))
    ref = _reference(x, conv_w)
    assert out.shape == ref.shape, (out.shape, ref.shape)
    err = jnp.max(jnp.abs(out - ref))
    assert jnp.allclose(out, ref, atol=1e-5, rtol=1e-5), f"max err {err}"


if __name__ == "__main__":
    key = jax.random.PRNGKey(0)
    kx1, kx2, kx3, kw = jax.random.split(key, 4)

    # Conv1d(1, 1, k=3, bias=False) weight, deterministic init.
    bound = 1.0 / jnp.sqrt(3.0)
    conv_w = jax.random.uniform(kw, (1, 3), jnp.float32, -bound, bound)

    # A) small map, hw multiple of 128, single full-hw block per batch element
    #    (grid (2, 1): both TCs busy on v7x).
    xa = jax.random.normal(kx1, (2, 8, 16, 16), dtype=jnp.float32)
    _check(xa, conv_w)

    # B) hw % 128 != 0 (zero-pad path) + batch folding (block (2, 72, 512),
    #    grid (2, 1)) + channel count that is not a multiple of 128.
    xb = jax.random.normal(kx2, (4, 72, 20, 20), dtype=jnp.float32)
    _check(xb, conv_w)

    # C) force a tiny block budget to exercise the multi-chunk spatial
    #    reduction path (accumulator init/finalize across grid axis 1).
    xc = jax.random.normal(kx3, (2, 8, 32, 32), dtype=jnp.float32)
    _check(xc, conv_w, block_budget_bytes=3 * 8 * 128 * 4)

    print("KERNEL_OK")
</pallas_src>

<mosaic_0001>
module attributes {stable_mosaic.version = 11 : i64} {
  func.func @_eca_kernel(%arg0: i32, %arg1: i32, %arg2: memref<3xf32, #tpu.memory_space<smem>>, %arg3: memref<1x8x256xf32, #tpu.memory_space<vmem>>, %arg4: memref<1x1x8xf32, #tpu.memory_space<vmem>>, %arg5: memref<1x8x128xf32, #tpu.memory_space<vmem>>) attributes {dimension_semantics = [#tpu.dimension_semantics<parallel>, #tpu.dimension_semantics<arbitrary>], iteration_bounds = array<i64: 2, 1>, scalar_prefetch = 0 : i64, scratch_operands = 1 : i64, tpu.core_type = #tpu.core_type<tc>, window_params = [{transform_indices = @transform_0, window_bounds = array<i64: 3>}, {transform_indices = @transform_1, window_bounds = array<i64: 1, 8, 256>}, {transform_indices = @transform_2, window_bounds = array<i64: 1, 1, 8>}]} {
    %c0_i32 = arith.constant 0 : i32
    %0 = arith.cmpi eq, %arg1, %c0_i32 : i32
    %1 = arith.extui %0 : i1 to i32
    %c0_i32_0 = arith.constant 0 : i32
    %2 = arith.cmpi ne, %1, %c0_i32_0 : i32
    scf.if %2 {
      %cst = arith.constant 0.000000e+00 : f32
      %14 = vector.broadcast %cst : f32 to vector<1x8x128xf32>
      %c0_19 = arith.constant 0 : index
      %c0_20 = arith.constant 0 : index
      %c0_21 = arith.constant 0 : index
      %15 = vector.load %arg5[%c0_19, %c0_20, %c0_21] : memref<1x8x128xf32, #tpu.memory_space<vmem>>, vector<1x8x128xf32>
      tpu.vector_store %arg5[%c0_19, %c0_20, %c0_21], %14 {strides = array<i32>} : memref<1x8x128xf32, #tpu.memory_space<vmem>>, vector<1x8x128xf32>,
    } else {
    }
    %c0 = arith.constant 0 : index
    %c0_1 = arith.constant 0 : index
    %c0_2 = arith.constant 0 : index
    %3 = vector.load %arg5[%c0, %c0_1, %c0_2] : memref<1x8x128xf32, #tpu.memory_space<vmem>>, vector<1x8x128xf32>
    %c0_3 = arith.constant 0 : index
    %c0_4 = arith.constant 0 : index
    %c0_5 = arith.constant 0 : index
    %4 = vector.load %arg3[%c0_3, %c0_4, %c0_5] : memref<1x8x256xf32, #tpu.memory_space<vmem>>, vector<1x8x128xf32>
    %5 = arith.addf %3, %4 : vector<1x8x128xf32>
    %c0_6 = arith.constant 0 : index
    %c0_7 = arith.constant 0 : index
    %c0_8 = arith.constant 0 : index
    %6 = vector.load %arg5[%c0_6, %c0_7, %c0_8] : memref<1x8x128xf32, #tpu.memory_space<vmem>>, vector<1x8x128xf32>
    tpu.vector_store %arg5[%c0_6, %c0_7, %c0_8], %5 {strides = array<i32>} : memref<1x8x128xf32, #tpu.memory_space<vmem>>, vector<1x8x128xf32>,
    %c0_9 = arith.constant 0 : index
    %c0_10 = arith.constant 0 : index
    %c0_11 = arith.constant 0 : index
    %7 = vector.load %arg5[%c0_9, %c0_10, %c0_11] : memref<1x8x128xf32, #tpu.memory_space<vmem>>, vector<1x8x128xf32>
    %c0_12 = arith.constant 0 : index
    %c0_13 = arith.constant 0 : index
    %c128 = arith.constant 128 : index
    %8 = vector.load %arg3[%c0_12, %c0_13, %c128] : memref<1x8x256xf32, #tpu.memory_space<vmem>>, vector<1x8x128xf32>
    %9 = arith.addf %7, %8 : vector<1x8x128xf32>
    %c0_14 = arith.constant 0 : index
    %c0_15 = arith.constant 0 : index
    %c0_16 = arith.constant 0 : index
    %10 = vector.load %arg5[%c0_14, %c0_15, %c0_16] : memref<1x8x128xf32, #tpu.memory_space<vmem>>, vector<1x8x128xf32>
    tpu.vector_store %arg5[%c0_14, %c0_15, %c0_16], %9 {strides = array<i32>} : memref<1x8x128xf32, #tpu.memory_space<vmem>>, vector<1x8x128xf32>,
    %c0_i32_17 = arith.constant 0 : i32
    %11 = arith.cmpi eq, %arg1, %c0_i32_17 : i32
    %12 = arith.extui %11 : i1 to i32
    %c0_i32_18 = arith.constant 0 : i32
    %13 = arith.cmpi ne, %12, %c0_i32_18 : i32
    scf.if %13 {
      %c0_19 = arith.constant 0 : index
      %c0_20 = arith.constant 0 : index
      %c0_21 = arith.constant 0 : index
      %14 = vector.load %arg5[%c0_19, %c0_20, %c0_21] : memref<1x8x128xf32, #tpu.memory_space<vmem>>, vector<1x8x128xf32>
      %cst = arith.constant dense<0.000000e+00> : vector<1x8xf32>
      %15 = vector.multi_reduction <add>, %14, %cst [2] : vector<1x8x128xf32> to vector<1x8xf32>
      %cst_22 = arith.constant 3.906250e-03 : f32
      %16 = vector.broadcast %cst_22 : f32 to vector<1x8xf32>
      %17 = arith.mulf %15, %16 : vector<1x8xf32>
      %18 = tpu.iota {dimensions = array<i32: 1>} : vector<1x8xi32>
      %c0_i32_23 = arith.constant 0 : i32
      %19 = vector.broadcast %c0_i32_23 : i32 to vector<1x8xi32>
      %20 = arith.cmpi eq, %18, %19 : vector<1x8xi32>
      %c1_i32 = arith.constant 1 : i32
      %21 = tpu.dynamic_rotate %17 by %c1_i32 dim 1 : vector<1x8xf32>, i32 -> vector<1x8xf32>
      %cst_24 = arith.constant 0.000000e+00 : f32
      %22 = vector.broadcast %cst_24 : f32 to vector<1x8xf32>
      %23 = arith.select %20, %22, %21 : vector<1x8xi1>, vector<1x8xf32>
      %c7_i32 = arith.constant 7 : i32
      %24 = vector.broadcast %c7_i32 : i32 to vector<1x8xi32>
      %25 = arith.cmpi eq, %18, %24 : vector<1x8xi32>
      %c7_i32_25 = arith.constant 7 : i32
      %26 = tpu.dynamic_rotate %17 by %c7_i32_25 dim 1 : vector<1x8xf32>, i32 -> vector<1x8xf32>
      %cst_26 = arith.constant 0.000000e+00 : f32
      %27 = vector.broadcast %cst_26 : f32 to vector<1x8xf32>
      %28 = arith.select %25, %27, %26 : vector<1x8xi1>, vector<1x8xf32>
      %c0_27 = arith.constant 0 : index
      %29 = memref.load %arg2[%c0_27] : memref<3xf32, #tpu.memory_space<smem>>
      %30 = vector.broadcast %29 : f32 to vector<1x8xf32>
      %31 = arith.mulf %30, %23 : vector<1x8xf32>
      %c1 = arith.constant 1 : index
      %32 = memref.load %arg2[%c1] : memref<3xf32, #tpu.memory_space<smem>>
      %33 = vector.broadcast %32 : f32 to vector<1x8xf32>
      %34 = arith.mulf %33, %17 : vector<1x8xf32>
      %35 = arith.addf %31, %34 : vector<1x8xf32>
      %c2 = arith.constant 2 : index
      %36 = memref.load %arg2[%c2] : memref<3xf32, #tpu.memory_space<smem>>
      %37 = vector.broadcast %36 : f32 to vector<1x8xf32>
      %38 = arith.mulf %37, %28 : vector<1x8xf32>
      %39 = arith.addf %35, %38 : vector<1x8xf32>
      %40 = arith.negf %39 : vector<1x8xf32>
      %41 = math.exp %40 : vector<1x8xf32>
      %cst_28 = arith.constant 1.000000e+00 : f32
      %42 = vector.broadcast %cst_28 : f32 to vector<1x8xf32>
      %43 = arith.addf %42, %41 : vector<1x8xf32>
      %44 = arith.divf %42, %43 : vector<1x8xf32>
      %45 = vector.shape_cast %44 : vector<1x8xf32> to vector<1x1x8xf32>
      %c0_29 = arith.constant 0 : index
      %c0_30 = arith.constant 0 : index
      %c0_31 = arith.constant 0 : index
      %46 = vector.load %arg4[%c0_29, %c0_30, %c0_31] : memref<1x1x8xf32, #tpu.memory_space<vmem>>, vector<1x1x8xf32>
      tpu.vector_store %arg4[%c0_29, %c0_30, %c0_31], %45 {strides = array<i32>} : memref<1x1x8xf32, #tpu.memory_space<vmem>>, vector<1x1x8xf32>,
    } else {
    }
    return
  }
  func.func @transform_0(%arg0: i32, %arg1: i32) -> i32 {
    %c0_i32 = arith.constant 0 : i32
    %c0_i32_0 = arith.constant 0 : i32
    return %c0_i32 : i32
  }
  func.func @transform_1(%arg0: i32, %arg1: i32) -> (i32, i32, i32) {
    %c0_i32 = arith.constant 0 : i32
    %c0_i32_0 = arith.constant 0 : i32
    return %arg0, %c0_i32, %arg1 : i32, i32, i32
  }
  func.func @transform_2(%arg0: i32, %arg1: i32) -> (i32, i32, i32) {
    %c0_i32 = arith.constant 0 : i32
    %c0_i32_0 = arith.constant 0 : i32
    %c0_i32_1 = arith.constant 0 : i32
    return %arg0, %c0_i32, %c0_i32_0 : i32, i32, i32
  }
}

</mosaic_0001>

<bundles_post_ra>
// kernel: tpu_custom_call.1
= control target key start
LH: loop header
LB: loop body
LE: loop exit
PB: predicated region body
PF: predicated region fallthrough
CT: control target
= control target key end

     0   :  { %7 = vsyncpa [#allocation6], 0  ;;  %s767_s0 = inlined_call_operand.hbm [shape: f32[3], index: 0, kind: input, shape index: {}]   ;;  %s768_s1 = inlined_call_operand.hbm [shape: f32[2,8,256], index: 1, kind: input, shape index: {}]   ;;  %s769_s2 = inlined_call_operand.hbm [shape: f32[2,1,8], index: 2, kind: output, shape index: {}]  }
   0x1   :  { %8 = vsyncpa [#allocation4], 0 }
   0x2   :  { %10 = vsyncpa [#allocation4 + $0x1], 0 }
   0x3   :  { %11 = vsyncpa [#allocation5], 0 }
   0x4   :  { %13 = vsyncpa [#allocation5 + $0x1], 0  ;;  %s621_s9 = smov 0   ;;  %s623_s10 = smov 0  }
   0x5   :  { %s625_s11 = smov 0   ;;  %s627_s12 = smov 0  }
   0x6   :  { %s629_s13 = smov 0   ;;  %s631_s14 = smov 0  }
   0x7 LB: > { %s372_s15 = sadd.s32 4294967295, %s600_s14   ;;  %s373_s16 = sadd.s32 4294967294, %s600_s14   ;;  %s600_s14 = sphi %s631_s14, %s19_s14   ;;  %s596_s13 = sphi %s629_s13, %s781_s13   ;;  %s592_s12 = sphi %s627_s12, %s780_s12   ;;  %s588_s11 = sphi %s625_s11, %s779_s11   ;;  %s584_s10 = sphi %s623_s10, %s778_s10   ;;  %s580_s9 = sphi %s621_s9, %s777_s9  }
   0x8   : > { %p74_p0 = scmp.ne.s32.totalorder %s584_s10, %s580_s9  ;;  %p655_p1 = scmp.eq.s32.totalorder %s372_s15, 0 }
   0x9   : > { %p659_p2 = scmp.eq.s32.totalorder %s372_s15, 1  ;;  %p104_p3 = scmp.eq.s32.totalorder %s373_s16, 1 }
   0xa   : > { %p665_p4 = por %p655_p1, %p74_p0  ;;  %p374_p5 = scmp.ge.s32.totalorder %s600_s14, 1 }
   0xb   : > { %p670_p6 = por %p104_p3, %p74_p0  ;;  %p111_p7 = scmp.lt.s32.totalorder %s600_s14, 3 }
   0xc   : > { %s123_s23 = sshll.u32 %s767_s0, 4  ;;  %s31_s25 = sadd.s32 1, %s596_s13  ;;  %s124_s23 = int_to_ptr.hbm [resolvable:$true] %s123_s23 }
   0xd   : > { %p678_p8 = pnand %p374_p5, %p111_p7  ;;  %s61_s26 = sadd.s32 1, %s588_s11 }
   0xe   : > { %p33_p12 = scmp.ge.s32.totalorder %s31_s25, 2  ;;  %s602_s27 = smov [#allocation3]  }
   0xf   : > { %p397_p10 = pneg %p678_p8  ;;  %p68_p13 = scmp.ne.s32.totalorder %s588_s11, %s584_s10 }
  0x10   : > { %s783_s25 = smov (%p33_p12, %s31_s25), 0  ;;  %p69_p0 = scmp.eq.s32.totalorder %s600_s14, 0 }
  0x11   : > { %p398_p11 = pnand %p397_p10, %p655_p1  ;;  %s56_s28 = ssub.s32 %s596_s13, %s783_s25 }
  0x12   : > { %p410_p3 = scmp.lt.s32.totalorder %s600_s14, 2  ;;  %p59_p5 = scmp.eq.s32.totalorder %s56_s28, 0 }
  0x13   : > { %400 = dma.hbm_to_smem (!%p398_p11), %s124_s23, 16, %s602_s27, [#allocation6]  }
  0x14   : > { %p70_p7 = por %p69_p0, %p68_p13  ;;  %p699_p9 = por %p659_p2, %p68_p13 }
  0x15   : > { %s134_s30 = sand.u32 1, %s588_s11   ;;  %s388_s5 = sshll.u32 %s596_s13, 4 }
  0x16   : > { %s705_s3 = scalar_select %p59_p5, %s588_s11, %s61_s26  }
  0x17   : > { %s377_s4 = sshll.u32 %s134_s30, 4  ;;  %s145_s8 = scalar_lea.hbm %s768_s1, %s388_s5 }
  0x18   : > { %s138_s15 = scalar_lea.vmem [#allocation7], %s377_s4  ;;  %s147_s21 = sshll.u32 %s145_s8, 4  ;;  %s148_s21 = int_to_ptr.hbm [resolvable:$true] %s147_s21 }
  0x19   : > { %s149_s16 = sshll.u32 %s138_s15, 4  ;;  %p402_p10 = pnand %p410_p3, %p70_p7  ;;  %s150_s16 = int_to_ptr.vmem [resolvable:$true] %s149_s16 }
  0x1a   : > { %s135_s18 = scalar_lea.sflag [#allocation4], %s134_s30  ;;  %158 = sbr.rel (%p678_p8) target bundleno = 546 (0x222), region = 28 }
  0x1b   : > { %404 = dma.hbm_to_vmem [thread:$0]  (!%p402_p10), %s148_s21, 256, %s150_s16, %s135_s18  }
  0x1f   : > { %567 = dma.done.wait (%p655_p1), [#allocation6], 16  }
  0x20   : > { %569 = vsyncadd (%p655_p1), [#allocation6], 4294967280  ;;  %s720_s22 = sand.u32 1, %s584_s10  }
  0x21   : > { %s382_s23 = sshll.u32 %s720_s22, 4  ;;  %s166_s26 = scalar_lea.sflag [#allocation4], %s720_s22 }
  0x22   : > { %s169_s27 = scalar_lea.vmem [#allocation7], %s382_s23 }
  0x23   : > { %571 = dma.done.wait (%p665_p4), %s166_s26, 256  }
  0x24   : > { %573 = vsyncadd (%p665_p4), %s166_s26, 4294967040 }
  0x25   : > { %175 = sfence }
  0x26   : > { %v198_v0 = vld [vmem:[%s169_s27] sm:$0xff]  ;;  %v202_v1 = vld [vmem:[%s169_s27 + $0x8] sm:$0xff]  ;;  %v212_v3 = vlaneseq  ;;  %s603_s17 = smov 8   ;;  %vm218_vm0 = vcmask 1047616   ;;  %s604_s19 = smov 127   ;;  %vm268_vm6 = vcmask 57344  }
  0x27   : > { %v203_v2 = vadd.f32 %v202_v1, %v198_v0  ;;  %s605_s24 = smov 121   ;;  %s383_s28 = sld [smem:[#allocation3 + $0x1]] }
  0x28   : > { %v213_v4 = vand.u32 127, %v212_v3  ;;  %s235_s30 = sld [smem:[#allocation3]]  ;;  %s279_s7 = scalar_lea.hbm %s769_s2, %s592_s12 }
  0x29   : > { %209 = vadd.xlane.f32.xlu0 %v203_v2  ;;  %s384_s4 = sld [smem:[#allocation3 + $0x2]]  ;;  %s190_s8 = scalar_lea.vmem [#allocation8], %s720_s22 }
  0x2a   : > { %vm230_vm1 = vcmp.eq.s32.totalorder %v213_v4, 7  ;;  %vm214_vm2 = vcmp.eq.s32.totalorder %v213_v4, 0  ;;  %s281_s15 = sshll.u32 %s190_s8, 4  ;;  %s283_s16 = sshll.u32 %s279_s7, 4  ;;  %s282_s15 = int_to_ptr.vmem [resolvable:$true] %s281_s15  ;;  %s284_s16 = int_to_ptr.hbm [resolvable:$true] %s283_s16 }
  0x2b   : > { %s271_s12 = scalar_lea.sflag [#allocation5], %s720_s22  ;;  %s528_s21 = sshra.s32 %s284_s16, 4  ;;  %s529_s21 = int_to_ptr.hbm [resolvable:$true] %s528_s21 }
  0x2c   : > { %s530_s18 = scalar_lea.hbm %s529_s21, 1  ;;  %s534_s27 = scalar_lea.hbm %s769_s2, 2 }
  0x2d   : > { %v239_v12 = vstv %s383_s28  ;;  %p531_p1 = scmp.ne.s32.totalorder %s529_s21, %s530_s18  ;;  %p535_p8 = scmp.lt.s32.totalorder %s529_s21, %s769_s2 }
  0x2e   : > { %v236_v15 = vstv %s235_s30  ;;  %p536_p11 = scmp.lt.s32.totalorder %s534_s27, %s530_s18 }
  0x2f   : > { %v246_v17 = vstv %s384_s4  ;;  %p532_p2 = pnand %p531_p1, %p699_p9 }
  0x30   : > { %p537_p12 = por %p536_p11, %p535_p8 }
  0x31   : > { %p533_p4 = pneg %p532_p2 }
  0x33   : > { %p538_p13 = pnand %p537_p12, %p533_p4 }
  0x9c   : > { %v210_v5 = vpop.xlane.xlu0 %209 }
  0x9d   : > { %v211_v6 = vmul.f32 0.00390625, %v210_v5 }
  0x9f   : > { %v216_v7 = vperm.slane %v211_v6, %v213_v4  ;;  %v240_v13 = vmul.f32 %v239_v12, %v211_v6 }
  0xa1   : > { %219 = vrot.lane.b32.xlu0 %v216_v7, %s603_s17  ;;  %v242_v20 = vperm.slane %v240_v13, %v213_v4 }
 0x113   : > { %v220_v8 = vpop.permute.xlu0 %219 }
 0x114   : > { %v221_v9 = vsel %vm218_vm0, %v220_v8, %v216_v7 }
 0x115   : > { %222 = vrot.lane.b32.xlu1 %v221_v9, %s603_s17 }
 0x187   : > { %v223_v10 = vpop.permute.xlu1 %222 }
 0x188   : > { %v224_v11 = vsel %vm218_vm0, %v223_v10, %v216_v7 }
 0x189   : > { %231 = vrot.lane.b32.xlu2 %v224_v11, %s604_s19  ;;  %226 = vrot.lane.b32.xlu1 %v224_v11, %s605_s24 }
 0x1e3   : > { %v232_v14 = vpop.permute.xlu2 %231 }
 0x1e4   : > { %v234_v18 = vsel %vm230_vm1, 0.0, %v232_v14 }
 0x1e5   : > { %v247_v22 = vmul.f32 %v246_v17, %v234_v18 }
 0x1fb   : > { %v227_v16 = vpop.permute.xlu1 %226 }
 0x1fc   : > { %v229_v19 = vsel %vm214_vm2, 0.0, %v227_v16 }
 0x1fd   : > { %v237_v21 = vmul.f32 %v236_v15, %v229_v19 }
 0x1ff   : > { %v244_v23 = vadd.f32 %v242_v20, %v237_v21 }
 0x201   : > { %v248_v24 = vadd.f32 %v247_v22, %v244_v23 }
 0x203   : > { %v385_v25 = vmul.f32 -1.442695, %v248_v24 }
 0x205   : > { %465 = vpow2.f32 %v385_v25 }
 0x20b   : > { %v466_v26 = vpop.eup %465 }
 0x20c   : > { %v252_v27 = vadd.f32 1.0, %v466_v26 }
 0x20e   : > { %467 = vrcp.f32 %v252_v27  ;;  %v264_v31 = vand.u32 2147483648, %v252_v27  ;;  %v262_v33 = vand.u32 2147483647, %v252_v27  ;;  %vm258_vm4 = vweird.f32 %v252_v27 }
 0x210   : > { %v265_v35 = vor.u32 1.1754944e-38, %v264_v31  ;;  %vm263_vm7 = vcmp.eq.f32.partialorder %v262_v33, 8.507059e+37 }
 0x214   : > { %v468_v28 = vpop.eup %467 }
 0x215   : > { %v254_v29 = vmul.f32 %v468_v28, %v252_v27  ;;  %vm259_vm3 = vweird.f32 %v468_v28 }
 0x216   : > { %vm260_vm5 = vmor %vm258_vm4, %vm259_vm3 }
 0x217   : > { %v255_v30 = vsub.f32 1.0, %v254_v29 }
 0x219   : > { %v256_v32 = vmul.f32 %v468_v28, %v255_v30 }
 0x21b   : > { %v257_v34 = vadd.f32 %v468_v28, %v256_v32 }
 0x21d   : > { %v261_v36 = vsel %vm260_vm5, %v468_v28, %v257_v34 }
 0x21e   : > { %v266_v37 = vsel %vm263_vm7, %v265_v35, %v261_v36 }
 0x21f   : > { %269 = vst.msk [vmem:[%s190_s8] sm:$0x1] %vm268_vm6, %v266_v37 }
 0x220   : > { %541 = shalt.err (!%p538_p13)
}
 0x221   : > { %395 = dma.vmem_to_hbm [thread:$0]  (%p699_p9), %s282_s15, 16, %s284_s16, %s271_s12  }
 0x222 PF: > { %s295_s22 = sand.u32 1, %s580_s9   ;;  %p776_p0 = scmp.ge.s32.totalorder %s600_s14, 2 }
 0x223   : > { %s296_s24 = scalar_lea.sflag [#allocation5], %s295_s22 }
 0x224   : > { %p406_p3 = pnand %p776_p0, %p670_p6 }
 0x226   : > { %p407_p5 = pneg %p406_p3 }
 0x228   : > { %575 = dma.done.wait (%p407_p5), %s296_s24, 16  }
 0x229   : > { %577 = vsyncadd (%p407_p5), %s296_s24, 4294967280  ;;  %s19_s14 = sadd.s32 1, %s600_s14   ;;  %s777_s9 = smov %s584_s10 }
 0x22a   : > { %p16_p7 = scmp.ge.s32.totalorder %s19_s14, 4   ;;  %s778_s10 = smov %s588_s11 }
 0x22b   : > { %s779_s11 = smov %s705_s3  ;;  %s780_s12 = smov %s596_s13 }
 0x22c   : > { %s781_s13 = smov %s783_s25  ;;  %18 = sbr.rel (!%p16_p7) target bundleno = 7 (0x7), region = 86 }
 0x231   :  { %301 = vsyncpa [#allocation4], 1 }
 0x232   :  { %303 = vsyncpa [#allocation4 + $0x1], 1 }
 0x233   :  { %304 = vsyncpa [#allocation5], 1 }
 0x234   :  { %306 = vsyncpa [#allocation5 + $0x1], 1 }
 0x235   :  { %307 = vsyncpa [#allocation6], 1 }
 0x236   :  { %309 = vsyncpa [#allocation6 + $0x1], 1 }

</bundles_post_ra>
